<compile_context>
chip_gen: v5e
topology: v5e:2x2
jax: 0.10.0
libtpu: 0.0.40
codegen_flags: <defaults>
</compile_context>

<pallas_src>
import jax
import jax.numpy as jnp
from jax.experimental import pallas as pl
from jax.experimental.pallas import tpu as pltpu


MIN_SIZE = 0.02
MAX_SIZE = 0.1
LN_EPS = 1e-5


def _sigmoid(z):
    # Stable sigmoid on the EUP (tanh), identical to 1/(1+exp(-z)).
    return 0.5 * (jnp.tanh(0.5 * z) + 1.0)


# ----------------------------------------------------------------------------
# Kernel
# ----------------------------------------------------------------------------
def waldo_head_kernel(
    feat_ref,     # (TILE_B, in_dim)
    w1_ref,       # (in_dim, hidden)
    normc_ref,    # (3, hidden): [b1; ln_gamma; ln_beta]
    wfused_ref,   # (hidden, 4*half): [w2@[wl1|ws1|wc1] | w2@wf1x]
    bfused_ref,   # (1, 4*half)
    wblk_ref,     # (3*half, 8) block-diagonal heads layer 2
    cvec_ref,     # (4, 8): [bblk; scale_vec; off_vec; put7]
    wf1c_ref,     # (8, half): confidence layer-1 rows for [boxes|scales|ctx|pad]
    wf2row_ref,   # (1, half): confidence layer-2 weight as a row
    bf2_ref,      # (1, 1)
    out_ref,      # (TILE_B, 8) fused output [boxes(4)|scales(2)|ctx(1)|conf(1)]
):
    hidden = w1_ref.shape[1]
    half = wf1c_ref.shape[1]
    n3 = wblk_ref.shape[0]          # 3 * half

    f = feat_ref[...]
    b1 = normc_ref[0:1, :]
    ln_g = normc_ref[1:2, :]
    ln_b = normc_ref[2:3, :]

    # ---- feature_processor: Linear -> LayerNorm -> ReLU (w2 folded away) ----
    h = jnp.dot(f, w1_ref[...], preferred_element_type=jnp.float32) + b1
    inv_n = 1.0 / float(hidden)
    s1 = jnp.sum(h, axis=-1, keepdims=True)
    s2 = jnp.sum(h * h, axis=-1, keepdims=True)
    mu = s1 * inv_n
    var = jnp.maximum(s2 * inv_n - mu * mu, 0.0)
    h = (h - mu) * jax.lax.rsqrt(var + LN_EPS) * ln_g + ln_b
    h = jnp.maximum(h, 0.0)

    # ---- fused layer-1 of all heads (location/scale/context + confidence-x) ----
    m = jnp.dot(h, wfused_ref[...], preferred_element_type=jnp.float32) + bfused_ref[...]
    h1 = jnp.maximum(m[:, :n3], 0.0)      # packed small-head hidden
    xpart = m[:, n3:]                     # x @ wf1x + bf1 (already folded)

    # ---- packed small heads layer 2 (block-diag) + per-lane affine remap ----
    pre8 = jnp.dot(h1, wblk_ref[...], preferred_element_type=jnp.float32) + cvec_ref[0:1, :]
    sig8 = _sigmoid(pre8)
    # lanes 0-3,6: identity; lanes 4-5: *(max-min)+min; lane 7 (pad): zeroed.
    head8 = sig8 * cvec_ref[1:2, :] + cvec_ref[2:3, :]

    # ---- confidence head on cat([x, boxes, scales, ctx]) ----
    pre_c = jnp.maximum(
        xpart + jnp.dot(head8, wf1c_ref[...], preferred_element_type=jnp.float32), 0.0)
    conf = _sigmoid(
        jnp.sum(pre_c * wf2row_ref[...], axis=-1, keepdims=True) + bf2_ref[...])

    # single lane-dense store: [boxes(4) | scales(2) | ctx(1) | conf(1)]
    out_ref[...] = head8 + conf * cvec_ref[3:4, :]


# ----------------------------------------------------------------------------
# Parameter construction (PyTorch-equivalent layout) and packing
# ----------------------------------------------------------------------------
def xavier_linear(key, fan_in, fan_out):
    limit = (6.0 / (fan_in + fan_out)) ** 0.5
    w = jax.random.uniform(key, (fan_in, fan_out), jnp.float32, -limit, limit)
    b = jnp.zeros((1, fan_out), jnp.float32)
    return w, b


def init_params(key, in_dim, hidden):
    """Per-layer params matching the PyTorch module (weights stored (fan_in, fan_out))."""
    keys = jax.random.split(key, 10)
    half = hidden // 2
    p = {}
    p["w1"], p["b1"] = xavier_linear(keys[0], in_dim, hidden)
    p["ln_g"] = jnp.ones((1, hidden), jnp.float32)
    p["ln_b"] = jnp.zeros((1, hidden), jnp.float32)
    p["w2"], p["b2"] = xavier_linear(keys[1], hidden, hidden)
    p["wl1"], p["bl1"] = xavier_linear(keys[2], hidden, half)
    p["wl2"], p["bl2"] = xavier_linear(keys[3], half, 4)
    p["ws1"], p["bs1"] = xavier_linear(keys[4], hidden, half)
    p["ws2"], p["bs2"] = xavier_linear(keys[5], half, 2)
    p["wc1"], p["bc1"] = xavier_linear(keys[6], hidden, half)
    p["wc2"], p["bc2"] = xavier_linear(keys[7], half, 1)
    p["wf1"], p["bf1"] = xavier_linear(keys[8], hidden + 7, half)
    p["wf2"], p["bf2"] = xavier_linear(keys[9], half, 1)
    return p


def pack_params(p, hidden):
    """Host-side packing: fold w2/b2 into head layer-1, fuse matmuls, merge constants."""
    half = hidden // 2

    # heads layer 1 concatenated along fan_out
    wh1 = jnp.concatenate([p["wl1"], p["ws1"], p["wc1"]], axis=1)          # (hidden, 3*half)
    bh1 = jnp.concatenate([p["bl1"], p["bs1"], p["bc1"]], axis=1)          # (1, 3*half)
    wf1x = p["wf1"][:hidden, :]                                            # (hidden, half)

    # fold x = h @ w2 + b2 and fuse the two layer-1 matmuls into one weight
    wfused = jnp.concatenate([p["w2"] @ wh1, p["w2"] @ wf1x], axis=1)      # (hidden, 4*half)
    bfused = jnp.concatenate(
        [p["b2"] @ wh1 + bh1, p["b2"] @ wf1x + p["bf1"]], axis=1)          # (1, 4*half)

    # heads layer 2 as block-diagonal (3*half, 8): lanes [4 box | 2 scale | 1 ctx | 1 pad]
    wblk = jnp.zeros((3 * half, 8), jnp.float32)
    wblk = wblk.at[0:half, 0:4].set(p["wl2"])
    wblk = wblk.at[half:2 * half, 4:6].set(p["ws2"])
    wblk = wblk.at[2 * half:3 * half, 6:7].set(p["wc2"])
    bblk = jnp.zeros((1, 8), jnp.float32)
    bblk = bblk.at[:, 0:4].set(p["bl2"])
    bblk = bblk.at[:, 4:6].set(p["bs2"])
    bblk = bblk.at[:, 6:7].set(p["bc2"])

    # per-lane affine constants (replace iota/compare/where in the kernel)
    d = MAX_SIZE - MIN_SIZE
    scale_vec = jnp.array([[1.0, 1.0, 1.0, 1.0, d, d, 1.0, 0.0]], jnp.float32)
    off_vec = jnp.array([[0.0, 0.0, 0.0, 0.0, MIN_SIZE, MIN_SIZE, 0.0, 0.0]], jnp.float32)
    put7 = jnp.array([[0.0, 0.0, 0.0, 0.0, 0.0, 0.0, 0.0, 1.0]], jnp.float32)
    cvec = jnp.concatenate([bblk, scale_vec, off_vec, put7], axis=0)       # (4, 8)

    # confidence layer-1 rows for the 7 combined features (+ zero pad row)
    wf1c = jnp.zeros((8, half), jnp.float32)
    wf1c = wf1c.at[0:7, :].set(p["wf1"][hidden:hidden + 7, :])             # (8, half)

    # norm/bias constants stacked
    normc = jnp.concatenate([p["b1"], p["ln_g"], p["ln_b"]], axis=0)       # (3, hidden)

    return {
        "w1": p["w1"],
        "normc": normc,
        "wfused": wfused,
        "bfused": bfused,
        "wblk": wblk,
        "cvec": cvec,
        "wf1c": wf1c,
        "wf2row": p["wf2"].T,                                              # (1, half)
        "bf2": p["bf2"],                                                   # (1, 1)
    }


PARAM_ORDER = ["w1", "normc", "wfused", "bfused", "wblk", "cvec", "wf1c", "wf2row", "bf2"]


# ----------------------------------------------------------------------------
# Wrapper
# ----------------------------------------------------------------------------
def _device_is_v7():
    try:
        return "v7" in jax.devices()[0].device_kind.lower()
    except Exception:
        return False


@jax.jit
def waldo_detection_head_forward(features, packed_params):
    B, in_dim = features.shape
    is_v7 = _device_is_v7()

    # Generation-aware batch tile: v7x has 64 MiB VMEM/TC (cap tile + limit),
    # v5e/v6e have 128 MiB (bigger tile amortizes the ~0.35us per-step cost).
    tile_b = 2048 if is_v7 else 4096
    if B < tile_b:
        tile_b = max(8, ((B + 7) // 8) * 8)
    B_pad = ((B + tile_b - 1) // tile_b) * tile_b
    if B_pad != B:
        features = jnp.pad(features, ((0, B_pad - B), (0, 0)))
    grid_steps = B_pad // tile_b

    if is_v7 and grid_steps >= 2:
        dim_sem = (pltpu.CORE_PARALLEL,)   # shard batch axis across both TCs
    else:
        dim_sem = ("parallel",)
    vmem_limit = (32 if is_v7 else 64) * 1024 * 1024

    feat_spec = pl.BlockSpec((tile_b, in_dim), lambda i: (i, 0))
    out_spec = pl.BlockSpec((tile_b, 8), lambda i: (i, 0))

    def const_spec(arr):  # weights/biases: full block, VMEM-resident across steps
        return pl.BlockSpec(arr.shape, lambda i: (0, 0))

    args = [features] + [packed_params[k] for k in PARAM_ORDER]
    in_specs = [feat_spec] + [const_spec(packed_params[k]) for k in PARAM_ORDER]

    out8 = pl.pallas_call(
        waldo_head_kernel,
        out_shape=jax.ShapeDtypeStruct((B_pad, 8), jnp.float32),
        grid=(grid_steps,),
        in_specs=in_specs,
        out_specs=out_spec,
        compiler_params=pltpu.CompilerParams(
            dimension_semantics=dim_sem,
            vmem_limit_bytes=vmem_limit,
        ),
    )(*args)

    out8 = out8[:B]
    return {
        "boxes": out8[:, 0:4],
        "scales": out8[:, 4:6],
        "context_scores": out8[:, 6:7],
        "confidence": out8[:, 7:8],
    }


# ----------------------------------------------------------------------------
# Pure-JAX reference (unpacked params) for a correctness check
# ----------------------------------------------------------------------------
def reference_forward(features, p):
    h = features @ p["w1"] + p["b1"]
    mu = jnp.mean(h, axis=-1, keepdims=True)
    var = jnp.mean(jnp.square(h - mu), axis=-1, keepdims=True)
    h = (h - mu) * jax.lax.rsqrt(var + LN_EPS) * p["ln_g"] + p["ln_b"]
    h = jnp.maximum(h, 0.0)
    x = h @ p["w2"] + p["b2"]

    boxes = _sigmoid(jnp.maximum(x @ p["wl1"] + p["bl1"], 0.0) @ p["wl2"] + p["bl2"])
    scales = _sigmoid(jnp.maximum(x @ p["ws1"] + p["bs1"], 0.0) @ p["ws2"] + p["bs2"])
    scales = scales * (MAX_SIZE - MIN_SIZE) + MIN_SIZE
    ctx = _sigmoid(jnp.maximum(x @ p["wc1"] + p["bc1"], 0.0) @ p["wc2"] + p["bc2"])
    combined = jnp.concatenate([x, boxes, scales, ctx], axis=-1)
    conf = _sigmoid(jnp.maximum(combined @ p["wf1"] + p["bf1"], 0.0) @ p["wf2"] + p["bf2"])
    return {"boxes": boxes, "scales": scales, "context_scores": ctx, "confidence": conf}


if __name__ == "__main__":
    B, IN_DIM, HIDDEN = 8, 16, 32

    key = jax.random.PRNGKey(0)
    k_feat, k_param = jax.random.split(key)
    features = jax.random.normal(k_feat, (B, IN_DIM), jnp.float32)
    params = init_params(k_param, IN_DIM, HIDDEN)
    packed = pack_params(params, HIDDEN)

    out = waldo_detection_head_forward(features, packed)
    jax.block_until_ready(out)

    assert out["boxes"].shape == (B, 4)
    assert out["scales"].shape == (B, 2)
    assert out["context_scores"].shape == (B, 1)
    assert out["confidence"].shape == (B, 1)
    assert bool(jnp.all(jnp.isfinite(out["boxes"])))
    assert bool(jnp.all((out["boxes"] > 0.0) & (out["boxes"] < 1.0)))
    assert bool(jnp.all((out["scales"] >= MIN_SIZE) & (out["scales"] <= MAX_SIZE)))
    assert bool(jnp.all((out["confidence"] > 0.0) & (out["confidence"] < 1.0)))

    ref = reference_forward(features, params)
    for name in ("boxes", "scales", "context_scores", "confidence"):
        err = float(jnp.max(jnp.abs(out[name] - ref[name])))
        assert err < 1e-3, f"{name} mismatch vs reference: max abs err {err}"

    print("KERNEL_OK")
</pallas_src>

<mosaic_0001>
module attributes {stable_mosaic.version = 11 : i64} {
  func.func @waldo_head_kernel(%arg0: i32, %arg1: memref<8x16xf32, #tpu.memory_space<vmem>>, %arg2: memref<16x32xf32, #tpu.memory_space<vmem>>, %arg3: memref<3x32xf32, #tpu.memory_space<vmem>>, %arg4: memref<32x64xf32, #tpu.memory_space<vmem>>, %arg5: memref<1x64xf32, #tpu.memory_space<vmem>>, %arg6: memref<48x8xf32, #tpu.memory_space<vmem>>, %arg7: memref<4x8xf32, #tpu.memory_space<vmem>>, %arg8: memref<8x16xf32, #tpu.memory_space<vmem>>, %arg9: memref<1x16xf32, #tpu.memory_space<vmem>>, %arg10: memref<1x1xf32, #tpu.memory_space<vmem>>, %arg11: memref<8x8xf32, #tpu.memory_space<vmem>>) attributes {dimension_semantics = [#tpu.dimension_semantics<parallel>], iteration_bounds = array<i64: 1>, scalar_prefetch = 0 : i64, scratch_operands = 0 : i64, tpu.core_type = #tpu.core_type<tc>, window_params = [{transform_indices = @transform_0, window_bounds = array<i64: 8, 16>}, {pipeline_mode = #tpu.pipeline_mode<synchronous>, transform_indices = @transform_1, window_bounds = array<i64: 16, 32>}, {pipeline_mode = #tpu.pipeline_mode<synchronous>, transform_indices = @transform_2, window_bounds = array<i64: 3, 32>}, {pipeline_mode = #tpu.pipeline_mode<synchronous>, transform_indices = @transform_3, window_bounds = array<i64: 32, 64>}, {pipeline_mode = #tpu.pipeline_mode<synchronous>, transform_indices = @transform_4, window_bounds = array<i64: 1, 64>}, {pipeline_mode = #tpu.pipeline_mode<synchronous>, transform_indices = @transform_5, window_bounds = array<i64: 48, 8>}, {pipeline_mode = #tpu.pipeline_mode<synchronous>, transform_indices = @transform_6, window_bounds = array<i64: 4, 8>}, {pipeline_mode = #tpu.pipeline_mode<synchronous>, transform_indices = @transform_7, window_bounds = array<i64: 8, 16>}, {pipeline_mode = #tpu.pipeline_mode<synchronous>, transform_indices = @transform_8, window_bounds = array<i64: 1, 16>}, {pipeline_mode = #tpu.pipeline_mode<synchronous>, transform_indices = @transform_9, window_bounds = array<i64: 1, 1>}, {transform_indices = @transform_10, window_bounds = array<i64: 8, 8>}]} {
    %c0 = arith.constant 0 : index
    %c0_0 = arith.constant 0 : index
    %0 = vector.load %arg1[%c0, %c0_0] : memref<8x16xf32, #tpu.memory_space<vmem>>, vector<8x16xf32>
    %c0_1 = arith.constant 0 : index
    %c0_2 = arith.constant 0 : index
    %1 = vector.load %arg3[%c0_1, %c0_2] : memref<3x32xf32, #tpu.memory_space<vmem>>, vector<1x32xf32>
    %c1 = arith.constant 1 : index
    %c0_3 = arith.constant 0 : index
    %2 = vector.load %arg3[%c1, %c0_3] : memref<3x32xf32, #tpu.memory_space<vmem>>, vector<1x32xf32>
    %c2 = arith.constant 2 : index
    %c0_4 = arith.constant 0 : index
    %3 = vector.load %arg3[%c2, %c0_4] : memref<3x32xf32, #tpu.memory_space<vmem>>, vector<1x32xf32>
    %c0_5 = arith.constant 0 : index
    %c0_6 = arith.constant 0 : index
    %4 = vector.load %arg2[%c0_5, %c0_6] : memref<16x32xf32, #tpu.memory_space<vmem>>, vector<16x32xf32>
    %cst = arith.constant dense<0.000000e+00> : vector<8x32xf32>
    %5 = tpu.matmul %0, %4, %cst {dimension_numbers = #tpu.dot_dimension_numbers<[1], [0], [0], [1], [0, 0, 1, 1], [], []>} : vector<8x16xf32>, vector<16x32xf32>, vector<8x32xf32> -> vector<8x32xf32>
    %6 = vector.broadcast %1 : vector<1x32xf32> to vector<8x32xf32>
    %7 = arith.addf %5, %6 : vector<8x32xf32>
    %cst_7 = arith.constant dense<0.000000e+00> : vector<8xf32>
    %8 = vector.multi_reduction <add>, %7, %cst_7 [1] : vector<8x32xf32> to vector<8xf32>
    %9 = vector.shape_cast %8 : vector<8xf32> to vector<8x1xf32>
    %10 = arith.mulf %7, %7 : vector<8x32xf32>
    %cst_8 = arith.constant dense<0.000000e+00> : vector<8xf32>
    %11 = vector.multi_reduction <add>, %10, %cst_8 [1] : vector<8x32xf32> to vector<8xf32>
    %12 = vector.shape_cast %11 : vector<8xf32> to vector<8x1xf32>
    %cst_9 = arith.constant 3.125000e-02 : f32
    %13 = vector.broadcast %cst_9 : f32 to vector<8x1xf32>
    %14 = arith.mulf %9, %13 : vector<8x1xf32>
    %cst_10 = arith.constant 3.125000e-02 : f32
    %15 = vector.broadcast %cst_10 : f32 to vector<8x1xf32>
    %16 = arith.mulf %12, %15 : vector<8x1xf32>
    %17 = arith.mulf %14, %14 : vector<8x1xf32>
    %18 = arith.subf %16, %17 : vector<8x1xf32>
    %cst_11 = arith.constant 0.000000e+00 : f32
    %19 = vector.broadcast %cst_11 : f32 to vector<8x1xf32>
    %20 = arith.maximumf %18, %19 : vector<8x1xf32>
    %21 = vector.broadcast %14 : vector<8x1xf32> to vector<8x32xf32>
    %22 = arith.subf %7, %21 : vector<8x32xf32>
    %cst_12 = arith.constant 9.99999974E-6 : f32
    %23 = vector.broadcast %cst_12 : f32 to vector<8x1xf32>
    %24 = arith.addf %20, %23 : vector<8x1xf32>
    %25 = math.rsqrt %24 : vector<8x1xf32>
    %26 = vector.broadcast %25 : vector<8x1xf32> to vector<8x32xf32>
    %27 = arith.mulf %22, %26 : vector<8x32xf32>
    %28 = vector.broadcast %2 : vector<1x32xf32> to vector<8x32xf32>
    %29 = arith.mulf %27, %28 : vector<8x32xf32>
    %30 = vector.broadcast %3 : vector<1x32xf32> to vector<8x32xf32>
    %31 = arith.addf %29, %30 : vector<8x32xf32>
    %cst_13 = arith.constant 0.000000e+00 : f32
    %32 = vector.broadcast %cst_13 : f32 to vector<8x32xf32>
    %33 = arith.maximumf %31, %32 : vector<8x32xf32>
    %c0_14 = arith.constant 0 : index
    %c0_15 = arith.constant 0 : index
    %34 = vector.load %arg4[%c0_14, %c0_15] : memref<32x64xf32, #tpu.memory_space<vmem>>, vector<32x64xf32>
    %cst_16 = arith.constant dense<0.000000e+00> : vector<8x64xf32>
    %35 = tpu.matmul %33, %34, %cst_16 {dimension_numbers = #tpu.dot_dimension_numbers<[1], [0], [0], [1], [0, 0, 1, 1], [], []>} : vector<8x32xf32>, vector<32x64xf32>, vector<8x64xf32> -> vector<8x64xf32>
    %c0_17 = arith.constant 0 : index
    %c0_18 = arith.constant 0 : index
    %36 = vector.load %arg5[%c0_17, %c0_18] : memref<1x64xf32, #tpu.memory_space<vmem>>, vector<1x64xf32>
    %37 = vector.broadcast %36 : vector<1x64xf32> to vector<8x64xf32>
    %38 = arith.addf %35, %37 : vector<8x64xf32>
    %39 = vector.extract_strided_slice %38 {offsets = [0, 0], sizes = [8, 48], strides = [1, 1]} : vector<8x64xf32> to vector<8x48xf32>
    %cst_19 = arith.constant 0.000000e+00 : f32
    %40 = vector.broadcast %cst_19 : f32 to vector<8x48xf32>
    %41 = arith.maximumf %39, %40 : vector<8x48xf32>
    %42 = vector.extract_strided_slice %38 {offsets = [0, 48], sizes = [8, 16], strides = [1, 1]} : vector<8x64xf32> to vector<8x16xf32>
    %c0_20 = arith.constant 0 : index
    %c0_21 = arith.constant 0 : index
    %43 = vector.load %arg6[%c0_20, %c0_21] : memref<48x8xf32, #tpu.memory_space<vmem>>, vector<48x8xf32>
    %cst_22 = arith.constant dense<0.000000e+00> : vector<8x8xf32>
    %44 = tpu.matmul %41, %43, %cst_22 {dimension_numbers = #tpu.dot_dimension_numbers<[1], [0], [0], [1], [0, 0, 1, 1], [], []>} : vector<8x48xf32>, vector<48x8xf32>, vector<8x8xf32> -> vector<8x8xf32>
    %c0_23 = arith.constant 0 : index
    %c0_24 = arith.constant 0 : index
    %45 = vector.load %arg7[%c0_23, %c0_24] : memref<4x8xf32, #tpu.memory_space<vmem>>, vector<1x8xf32>
    %46 = vector.broadcast %45 : vector<1x8xf32> to vector<8x8xf32>
    %47 = arith.addf %44, %46 : vector<8x8xf32>
    %cst_25 = arith.constant 5.000000e-01 : f32
    %48 = vector.broadcast %cst_25 : f32 to vector<8x8xf32>
    %49 = arith.mulf %48, %47 : vector<8x8xf32>
    %50 = math.tanh %49 : vector<8x8xf32>
    %cst_26 = arith.constant 1.000000e+00 : f32
    %51 = vector.broadcast %cst_26 : f32 to vector<8x8xf32>
    %52 = arith.addf %50, %51 : vector<8x8xf32>
    %cst_27 = arith.constant 5.000000e-01 : f32
    %53 = vector.broadcast %cst_27 : f32 to vector<8x8xf32>
    %54 = arith.mulf %53, %52 : vector<8x8xf32>
    %c1_28 = arith.constant 1 : index
    %c0_29 = arith.constant 0 : index
    %55 = vector.load %arg7[%c1_28, %c0_29] : memref<4x8xf32, #tpu.memory_space<vmem>>, vector<1x8xf32>
    %56 = vector.broadcast %55 : vector<1x8xf32> to vector<8x8xf32>
    %57 = arith.mulf %54, %56 : vector<8x8xf32>
    %c2_30 = arith.constant 2 : index
    %c0_31 = arith.constant 0 : index
    %58 = vector.load %arg7[%c2_30, %c0_31] : memref<4x8xf32, #tpu.memory_space<vmem>>, vector<1x8xf32>
    %59 = vector.broadcast %58 : vector<1x8xf32> to vector<8x8xf32>
    %60 = arith.addf %57, %59 : vector<8x8xf32>
    %c0_32 = arith.constant 0 : index
    %c0_33 = arith.constant 0 : index
    %61 = vector.load %arg8[%c0_32, %c0_33] : memref<8x16xf32, #tpu.memory_space<vmem>>, vector<8x16xf32>
    %cst_34 = arith.constant dense<0.000000e+00> : vector<8x16xf32>
    %62 = tpu.matmul %60, %61, %cst_34 {dimension_numbers = #tpu.dot_dimension_numbers<[1], [0], [0], [1], [0, 0, 1, 1], [], []>} : vector<8x8xf32>, vector<8x16xf32>, vector<8x16xf32> -> vector<8x16xf32>
    %63 = arith.addf %42, %62 : vector<8x16xf32>
    %cst_35 = arith.constant 0.000000e+00 : f32
    %64 = vector.broadcast %cst_35 : f32 to vector<8x16xf32>
    %65 = arith.maximumf %63, %64 : vector<8x16xf32>
    %c0_36 = arith.constant 0 : index
    %c0_37 = arith.constant 0 : index
    %66 = vector.load %arg9[%c0_36, %c0_37] : memref<1x16xf32, #tpu.memory_space<vmem>>, vector<1x16xf32>
    %67 = vector.broadcast %66 : vector<1x16xf32> to vector<8x16xf32>
    %68 = arith.mulf %65, %67 : vector<8x16xf32>
    %cst_38 = arith.constant dense<0.000000e+00> : vector<8xf32>
    %69 = vector.multi_reduction <add>, %68, %cst_38 [1] : vector<8x16xf32> to vector<8xf32>
    %70 = vector.shape_cast %69 : vector<8xf32> to vector<8x1xf32>
    %c0_39 = arith.constant 0 : index
    %c0_40 = arith.constant 0 : index
    %71 = vector.load %arg10[%c0_39, %c0_40] : memref<1x1xf32, #tpu.memory_space<vmem>>, vector<1x1xf32>
    %72 = vector.broadcast %71 : vector<1x1xf32> to vector<8x1xf32>
    %73 = arith.addf %70, %72 : vector<8x1xf32>
    %cst_41 = arith.constant 5.000000e-01 : f32
    %74 = vector.broadcast %cst_41 : f32 to vector<8x1xf32>
    %75 = arith.mulf %74, %73 : vector<8x1xf32>
    %76 = math.tanh %75 : vector<8x1xf32>
    %cst_42 = arith.constant 1.000000e+00 : f32
    %77 = vector.broadcast %cst_42 : f32 to vector<8x1xf32>
    %78 = arith.addf %76, %77 : vector<8x1xf32>
    %cst_43 = arith.constant 5.000000e-01 : f32
    %79 = vector.broadcast %cst_43 : f32 to vector<8x1xf32>
    %80 = arith.mulf %79, %78 : vector<8x1xf32>
    %c3 = arith.constant 3 : index
    %c0_44 = arith.constant 0 : index
    %81 = vector.load %arg7[%c3, %c0_44] : memref<4x8xf32, #tpu.memory_space<vmem>>, vector<1x8xf32>
    %82 = vector.broadcast %80 : vector<8x1xf32> to vector<8x8xf32>
    %83 = vector.broadcast %81 : vector<1x8xf32> to vector<8x8xf32>
    %84 = arith.mulf %82, %83 : vector<8x8xf32>
    %85 = arith.addf %60, %84 : vector<8x8xf32>
    %c0_45 = arith.constant 0 : index
    %c0_46 = arith.constant 0 : index
    %86 = vector.load %arg11[%c0_45, %c0_46] : memref<8x8xf32, #tpu.memory_space<vmem>>, vector<8x8xf32>
    tpu.vector_store %arg11[%c0_45, %c0_46], %85 {strides = array<i32>} : memref<8x8xf32, #tpu.memory_space<vmem>>, vector<8x8xf32>,
    return
  }
  func.func @transform_0(%arg0: i32) -> (i32, i32) {
    %c0_i32 = arith.constant 0 : i32
    %c0_i32_0 = arith.constant 0 : i32
    return %arg0, %c0_i32 : i32, i32
  }
  func.func @transform_1(%arg0: i32) -> (i32, i32) {
    %c0_i32 = arith.constant 0 : i32
    %c0_i32_0 = arith.constant 0 : i32
    %c0_i32_1 = arith.constant 0 : i32
    return %c0_i32, %c0_i32_0 : i32, i32
  }
  func.func @transform_2(%arg0: i32) -> (i32, i32) {
    %c0_i32 = arith.constant 0 : i32
    %c0_i32_0 = arith.constant 0 : i32
    %c0_i32_1 = arith.constant 0 : i32
    return %c0_i32, %c0_i32_0 : i32, i32
  }
  func.func @transform_3(%arg0: i32) -> (i32, i32) {
    %c0_i32 = arith.constant 0 : i32
    %c0_i32_0 = arith.constant 0 : i32
    %c0_i32_1 = arith.constant 0 : i32
    return %c0_i32, %c0_i32_0 : i32, i32
  }
  func.func @transform_4(%arg0: i32) -> (i32, i32) {
    %c0_i32 = arith.constant 0 : i32
    %c0_i32_0 = arith.constant 0 : i32
    %c0_i32_1 = arith.constant 0 : i32
    return %c0_i32, %c0_i32_0 : i32, i32
  }
  func.func @transform_5(%arg0: i32) -> (i32, i32) {
    %c0_i32 = arith.constant 0 : i32
    %c0_i32_0 = arith.constant 0 : i32
    %c0_i32_1 = arith.constant 0 : i32
    return %c0_i32, %c0_i32_0 : i32, i32
  }
  func.func @transform_6(%arg0: i32) -> (i32, i32) {
    %c0_i32 = arith.constant 0 : i32
    %c0_i32_0 = arith.constant 0 : i32
    %c0_i32_1 = arith.constant 0 : i32
    return %c0_i32, %c0_i32_0 : i32, i32
  }
  func.func @transform_7(%arg0: i32) -> (i32, i32) {
    %c0_i32 = arith.constant 0 : i32
    %c0_i32_0 = arith.constant 0 : i32
    %c0_i32_1 = arith.constant 0 : i32
    return %c0_i32, %c0_i32_0 : i32, i32
  }
  func.func @transform_8(%arg0: i32) -> (i32, i32) {
    %c0_i32 = arith.constant 0 : i32
    %c0_i32_0 = arith.constant 0 : i32
    %c0_i32_1 = arith.constant 0 : i32
    return %c0_i32, %c0_i32_0 : i32, i32
  }
  func.func @transform_9(%arg0: i32) -> (i32, i32) {
    %c0_i32 = arith.constant 0 : i32
    %c0_i32_0 = arith.constant 0 : i32
    %c0_i32_1 = arith.constant 0 : i32
    return %c0_i32, %c0_i32_0 : i32, i32
  }
  func.func @transform_10(%arg0: i32) -> (i32, i32) {
    %c0_i32 = arith.constant 0 : i32
    %c0_i32_0 = arith.constant 0 : i32
    return %arg0, %c0_i32 : i32, i32
  }
}

</mosaic_0001>

<bundles_post_ra>
// kernel: waldo_detection_head_forward.1
= control target key start
LH: loop header
LB: loop body
LE: loop exit
PB: predicated region body
PF: predicated region fallthrough
CT: control target
= control target key end

     0   :  { %s482_s0 = inlined_call_operand.vmem [shape: f32[8,16], index: 0, kind: input, shape index: {}]   ;;  %s483_s1 = inlined_call_operand.vmem [shape: f32[16,32], index: 1, kind: input, shape index: {}]   ;;  %s484_s2 = inlined_call_operand.vmem [shape: f32[3,32], index: 2, kind: input, shape index: {}]   ;;  %s485_s3 = inlined_call_operand.vmem [shape: f32[32,64], index: 3, kind: input, shape index: {}]   ;;  %s486_s4 = inlined_call_operand.vmem [shape: f32[1,64], index: 4, kind: input, shape index: {}]   ;;  %s487_s5 = inlined_call_operand.vmem [shape: f32[48,8], index: 5, kind: input, shape index: {}]   ;;  %s488_s6 = inlined_call_operand.hbm [shape: f32[4,8], index: 6, kind: input, shape index: {}]   ;;  %s489_s7 = inlined_call_operand.hbm [shape: f32[8,16], index: 7, kind: input, shape index: {}]   ;;  %s490_s8 = inlined_call_operand.vmem [shape: f32[1,16], index: 8, kind: input, shape index: {}]   ;;  %s491_s9 = inlined_call_operand.<no memory space> [shape: f32[1,1], index: 9, kind: input, shape index: {}]   ;;  %s492_s10 = inlined_call_operand.vmem [shape: f32[8,8], index: 10, kind: output, shape index: {}]  }
   0x1   :  { %v15_v0 = vstv %s491_s9 }
   0x2   :  { %16 = vst [vmem:[#allocation2] sm:$0x1] %v15_v0 }
   0x3   :  { %17 = vsyncpa [#allocation4], 0  ;;  %s36_s17 = sshll.u32 %s488_s6, 4  ;;  %s37_s17 = int_to_ptr.hbm [resolvable:$true] %s36_s17 }
   0x4   :  { %18 = vsyncpa [#allocation6], 0  ;;  %s349_s18 = smov [#allocation3]   ;;  %s47_s22 = sshll.u32 %s489_s7, 4  ;;  %s48_s22 = int_to_ptr.hbm [resolvable:$true] %s47_s22 }
   0x5   :  { %s38_s19 = sshll.u32 %s349_s18, 4  ;;  %s350_s23 = smov [#allocation5]   ;;  %s39_s19 = int_to_ptr.vmem [resolvable:$true] %s38_s19 }
   0x6   :  { %41 = dma.hbm_to_vmem [thread:$0]  %s37_s17, 64, %s39_s19, [#allocation4]  }
   0x7   :  { %s49_s24 = sshll.u32 %s350_s23, 4  ;;  %s50_s24 = int_to_ptr.vmem [resolvable:$true] %s49_s24 }
   0x8   :  { %52 = dma.hbm_to_vmem [thread:$0]  %s48_s22, 128, %s50_s24, [#allocation6]  }
   0x9   :  { %345 = dma.done.wait [#allocation4], 64  }
   0xa   :  { %346 = vsyncadd [#allocation4], 4294967232 }
   0xb   :  { %347 = dma.done.wait [#allocation6], 128  }
   0xc   :  { %348 = vsyncadd [#allocation6], 4294967168  ;;  %v70_v1 = vld [vmem:[%s483_s1 + $0x8] sm:$0xff]  ;;  %v69_v2 = vld [vmem:[%s483_s1] sm:$0xff]  ;;  %vm72_vm0 = vcmask 130048   ;;  %vm96_vm1 = vcmask 261120  }
   0xd   :  { %90 = vmatpush.msra.mxu0 %v70_v1  ;;  %v65_v3 = vld [vmem:[%s482_s0] sm:$0xff]  ;;  %v130_v11 = vld [vmem:[%s485_s3 + $0x18] sm:$0xff]  ;;  %v129_v12 = vld [vmem:[%s485_s3 + $0x10] sm:$0xff]  ;;  %vm167_vm5 = vcmask 392192   ;;  %vm202_vm6 = vcmask 64512   ;;  %s352_s0 = smov 80  }
   0xe   :  { %v281_v4 = vld [vmem:[%s484_s2] ss:$0 sm:$0xff]  ;;  %150 = vmatpush.msra.mxu1 %v130_v11  ;;  %v128_v13 = vld [vmem:[%s485_s3 + $0x8] sm:$0xff]  ;;  %v162_v23 = vld [vmem:[%s487_s5 + $0x18] sm:$0xff] }
   0xf   :  { %91 = vmatpush.msra.mxu0 %v69_v2  ;;  %v127_v14 = vld [vmem:[%s485_s3] sm:$0xff]  ;;  %v164_v20 = vld [vmem:[%s487_s5 + $0x28] sm:$0xff]  ;;  %v161_v39 = vld [vmem:[%s487_s5 + $0x10] sm:$0xff] }
  0x10   :  { %271 = vmatmul.msk.f32.vlgmr.msra.gmra.mxu0 %vm72_vm0, %v65_v3  ;;  %151 = vmatpush.msra.mxu1 %v129_v12  ;;  %v163_v21 = vld [vmem:[%s487_s5 + $0x20] sm:$0xff]  ;;  %v160_v40 = vld [vmem:[%s487_s5 + $0x8] sm:$0xff]  ;;  %v353_v3 = vmov 0  }
  0x11   :  { %181 = vmatpush.msra.mxu2 %v164_v20  ;;  %v282_v32 = vld [vmem:[%s484_s2 + $0x1] ss:$0 sm:$0xff]  ;;  %v283_v35 = vld [vmem:[%s484_s2 + $0x2] ss:$0 sm:$0xff]  ;;  %v284_v42 = vld [vmem:[%s486_s4] ss:$0 sm:$0xff]  ;;  %280 = vset.pattern.permute.xlu0 %v353_v3 }
  0x12   :  { %152 = vmatpush.msra.mxu1 %v128_v13  ;;  %v159_v41 = vld [vmem:[%s487_s5] sm:$0xff]  ;;  %s351_s4 = smov 48  }
  0x13   :  { %182 = vmatpush.msra.mxu2 %v163_v21  ;;  %v201_v46 = vld [vmem:[#allocation5] sm:$0xff]  ;;  %v285_v47 = vld [vmem:[#allocation3] ss:$0 sm:$0xff]  ;;  %v286_v53 = vld [vmem:[#allocation3 + $0x1] ss:$0 sm:$0xff] }
  0x14   :  { %153 = vmatpush.msra.mxu1 %v127_v14  ;;  %221 = vmatpush.msra.mxu3 %v201_v46  ;;  %v287_v55 = vld [vmem:[#allocation3 + $0x2] ss:$0 sm:$0xff]  ;;  %v288_v59 = vld [vmem:[%s490_s8] ss:$0 sm:$0xff]  ;;  %v290_v11 = vld [vmem:[#allocation3 + $0x3] ss:$0 sm:$0xff] }
  0x15   :  { %183 = vmatpush.msra.mxu2 %v162_v23 }
  0x17   :  { %184 = vmatpush.msra.mxu2 %v161_v39 }
  0x19   :  { %185 = vmatpush.msra.mxu2 %v160_v40 }
  0x1b   :  { %186 = vmatpush.msra.mxu2 %v159_v41 }
  0x8d   :  { %v93_v5 = vpop.f32.mrf.mxu0 }
  0x8e   :  { %v94_v6 = vadd.f32 %v281_v4, %v93_v5  ;;  %v289_v4 = vld [vmem:[#allocation2] ss:$0 sm:$0xff] }
  0x90   :  { %v97_v7 = vsel %vm96_vm1, %v94_v6, 0.0  ;;  %v100_v8 = vmul.f32 %v94_v6, %v94_v6 }
  0x91   :  { %98 = vadd.xlane.f32.xlu0 %v97_v7 }
  0x92   :  { %v101_v9 = vsel %vm96_vm1, %v100_v8, 0.0 }
  0x99   :  { %102 = vadd.xlane.f32.xlu0 %v101_v9 }
 0x104   :  { %v99_v10 = vpop.xlane.xlu0 %98 }
 0x105   :  { %v104_v15 = vmul.f32 0.03125, %v99_v10 }
 0x107   :  { %v106_v17 = vmul.f32 %v104_v15, %v104_v15  ;;  %v109_v31 = vsub.f32 %v94_v6, %v104_v15 }
 0x10c   :  { %v103_v16 = vpop.xlane.xlu0 %102 }
 0x10d   :  { %v105_v18 = vmul.f32 0.03125, %v103_v16 }
 0x10f   :  { %v107_v19 = vsub.f32 %v105_v18, %v106_v17 }
 0x111   :  { %v108_v22 = vmax.f32 %v107_v19, 0.0 }
 0x113   :  { %v110_v24 = vadd.f32 1e-05, %v108_v22 }
 0x115   :  { %291 = vrsqrt.f32 %v110_v24  ;;  %vm117_vm3 = vweird.f32 %v110_v24 }
 0x11b   :  { %v292_v25 = vpop.eup %291 }
 0x11c   :  { %v112_v26 = vmul.f32 %v292_v25, %v110_v24  ;;  %vm118_vm2 = vweird.f32 %v292_v25 }
 0x11d   :  { %vm119_vm4 = vmor %vm117_vm3, %vm118_vm2 }
 0x11e   :  { %v113_v27 = vmul.f32 %v292_v25, %v112_v26 }
 0x120   :  { %v114_v28 = vmul.f32 0.5, %v113_v27 }
 0x122   :  { %v115_v29 = vsub.f32 1.5, %v114_v28 }
 0x124   :  { %v116_v30 = vmul.f32 %v292_v25, %v115_v29 }
 0x126   :  { %v120_v33 = vsel %vm119_vm4, %v292_v25, %v116_v30 }
 0x127   :  { %v121_v34 = vmul.f32 %v120_v33, %v109_v31 }
 0x129   :  { %v123_v36 = vmul.f32 %v282_v32, %v121_v34 }
 0x12b   :  { %v125_v37 = vadd.f32 %v283_v35, %v123_v36 }
 0x12d   :  { %v126_v38 = vmax.f32 %v125_v37, 0.0 }
 0x12f   :  { %272 = vmatmul.msk.f32.vlgmr.msra.gmra.mxu1 %vm96_vm1, %v126_v38 }
 0x1ac   :  { %v155_v43 = vpop.f32.mrf.mxu1 }
 0x1ad   :  { %v156_v44 = vadd.f32 %v284_v42, %v155_v43 }
 0x1af   :  { %v158_v45 = vmax.f32 %v156_v44, 0.0 }
 0x1b1   :  { %273 = vmatmul.msk.f32.vlgmr.msra.gmra.mxu2 %vm167_vm5, %v158_v45 }
 0x234   :  { %v188_v48 = vpop.f32.mrf.mxu2 }
 0x235   :  { %v189_v49 = vadd.f32 %v285_v47, %v188_v48 }
 0x237   :  { %v191_v50 = vmul.f32 0.5, %v189_v49 }
 0x239   :  { %293 = vtanh.f32 %v191_v50 }
 0x23f   :  { %v294_v51 = vpop.eup %293 }
 0x240   :  { %v193_v52 = vadd.f32 1.0, %v294_v51 }
 0x242   :  { %v194_v54 = vmul.f32 0.5, %v193_v52 }
 0x244   :  { %v197_v56 = vmul.f32 %v286_v53, %v194_v54 }
 0x246   :  { %v200_v57 = vadd.f32 %v287_v55, %v197_v56 }
 0x248   :  { %274 = vmatmul.msk.f32.vlgmr.msra.gmra.mxu3 %vm202_vm6, %v200_v57 }
 0x2cb   :  { %v223_v58 = vpop.f32.mrf.mxu3 }
 0x2cc   :  { %227 = vrot.lane.b32.xlu1 %v223_v58, %s351_s4 }
 0x2d4   :  { %235 = vrot.lane.b32.xlu1 %v288_v59, %s351_s4 }
 0x33e   :  { %v228_v60 = vpop.permute.xlu1 %227 }
 0x33f   :  { %v230_v61 = vadd.f32 %v228_v60, %v156_v44 }
 0x341   :  { %v231_v62 = vmax.f32 %v230_v61, 0.0 }
 0x346   :  { %v236_v63 = vpop.permute.xlu1 %235 }
 0x347   :  { %v238_v0 = vmul.f32 %v236_v63, %v231_v62 }
 0x349   :  { %240 = vrot.lane.b32.xlu2 %v238_v0, %s352_s0 }
 0x3a3   :  { %v241_v1 = vpop.permute.xlu2 %240 }
 0x3a4   :  { %v243_v2 = vsel %vm72_vm0, %v241_v1, 0.0 }
 0x3a5   :  { %244 = vadd.xlane.f32.xlu2 %v243_v2 }
 0x418   :  { %v245_v5 = vpop.xlane.xlu2 %244 }
 0x419   :  { %v250_v6 = vadd.f32 %v289_v4, %v245_v5 }
 0x41b   :  { %v251_v7 = vmul.f32 0.5, %v250_v6 }
 0x41d   :  { %295 = vtanh.f32 %v251_v7 }
 0x423   :  { %v296_v8 = vpop.eup %295 }
 0x424   :  { %v253_v9 = vadd.f32 1.0, %v296_v8 }
 0x426   :  { %v254_v10 = vmul.f32 0.5, %v253_v9 }
 0x428   :  { %258 = vperm.xlu0 %280, %v254_v10  }
 0x49a   :  { %v259_v12 = vpop.permute.xlu0 %258 }
 0x49b   :  { %v262_v13 = vmul.f32 %v290_v11, %v259_v12 }
 0x49d   :  { %v263_v14 = vadd.f32 %v262_v13, %v200_v57 }
 0x49f   :  { %264 = vst.msk [vmem:[%s492_s10] sm:$0xff] %vm202_vm6, %v263_v14 }
 0x4a0   :  { %269 = vsyncpa [#allocation4], 1 }
 0x4a1   :  { %270 = vsyncpa [#allocation6], 1 }

</bundles_post_ra>
